<compile_context>
chip_gen: v7x
topology: tpu7x:2x2x1
jax: 0.10.0
libtpu: 0.0.40
codegen_flags: <defaults>
</compile_context>

<pallas_src>
import functools

import jax
import jax.numpy as jnp
from jax.experimental import pallas as pl
from jax.experimental.pallas import tpu as pltpu


def _focus_kernel(x_ref, wqkv_ref, wo_ref, bqkv_ref, bo_ref, out_ref,
                  *, batch_block, num_chunks):
    """One grid step: `batch_block` batch elements, all chunks at once.

    x_ref    : (Bb*C, H)  bf16   flattened candidate tokens
    wqkv_ref : (H, 3H)    bf16   fused [Wq^T | Wk^T | Wv^T]
    wo_ref   : (H, H)     bf16   Wo^T
    bqkv_ref : (1, 3H)    f32    fused [bq | bk | bv]
    bo_ref   : (1, H)     f32
    out_ref  : (Bb*C, H)  f32
    """
    Bb, C = batch_block, num_chunks
    H = x_ref.shape[-1]

    x = x_ref[...]                                              # (Bb*C, H) bf16

    # Fused Q/K/V projection: single MXU push (N = 3H), f32 accumulation.
    qkv = jnp.dot(x, wqkv_ref[...],
                  preferred_element_type=jnp.float32) + bqkv_ref[...]

    q = qkv[:, :H].reshape(Bb, C, H)
    k = qkv[:, H:2 * H].reshape(Bb, C, H)
    v = qkv[:, 2 * H:].reshape(Bb, C, H)

    # attention_scores = q @ k^T per batch element (contract last dims; no
    # explicit transpose -> no XLU relayout).  No 1/sqrt(H) scaling, matching
    # the PyTorch module.
    scores = jnp.einsum('bcd,bed->bce', q, k,
                        preferred_element_type=jnp.float32)     # (Bb, C, C)

    # Numerically-stable softmax over the last dim; reciprocal on the EUP.
    scores = scores - jnp.max(scores, axis=-1, keepdims=True)
    e = jnp.exp(scores)
    probs = e * pl.reciprocal(jnp.sum(e, axis=-1, keepdims=True), approx=True)

    # context = probs @ v
    ctx = jnp.einsum('bce,bed->bcd', probs, v,
                     preferred_element_type=jnp.float32)        # (Bb, C, H)

    # output = context @ Wo^T + bo  (bf16 operands, f32 accumulation / bias).
    ctx2d = ctx.reshape(Bb * C, H).astype(jnp.bfloat16)
    out = jnp.dot(ctx2d, wo_ref[...],
                  preferred_element_type=jnp.float32) + bo_ref[...]

    out_ref[...] = out.astype(out_ref.dtype)


@jax.jit
def focus_attention_pallas(candidate_tokens, wq_t, wk_t, wv_t, wo_t,
                           bq, bk, bv, bo):
    """candidate_tokens: (B, C, H) f32; w*_t: (H, H) pre-transposed so that
    x @ w_t == PyTorch x @ W.T; b*: (1, H).  Returns (B, C, H) f32."""
    B, C, H = candidate_tokens.shape

    # --- operand fusion / dtype glue (done once, outside the kernel) ---
    wqkv = jnp.concatenate([wq_t, wk_t, wv_t], axis=1).astype(jnp.bfloat16)
    bqkv = jnp.concatenate([bq, bk, bv], axis=1).astype(jnp.float32)
    wo_b = wo_t.astype(jnp.bfloat16)
    bo_f = bo.astype(jnp.float32)
    x2d = candidate_tokens.reshape(B * C, H).astype(jnp.bfloat16)

    # --- choose how many batch elements per grid step ---
    # Target >= 128 rows per step to fill the MXU M dimension, but keep a
    # "parallel" grid axis when the batch is large so both TensorCores (v7x)
    # can split it.
    batch_block = max(1, min(B, pl.cdiv(128, C)))
    while B % batch_block:                     # keep blocks uniform
        batch_block -= 1
    if (batch_block * C) % 8 and batch_block != B:
        batch_block = B                        # keep (Bb*C) sublane-aligned
    grid = (B // batch_block,)
    rows = batch_block * C

    x_spec = pl.BlockSpec((rows, H), lambda b: (b, 0))
    wqkv_spec = pl.BlockSpec((H, 3 * H), lambda b: (0, 0))
    wo_spec = pl.BlockSpec((H, H), lambda b: (0, 0))
    bqkv_spec = pl.BlockSpec((1, 3 * H), lambda b: (0, 0))
    bo_spec = pl.BlockSpec((1, H), lambda b: (0, 0))
    out_spec = pl.BlockSpec((rows, H), lambda b: (b, 0))

    kernel = functools.partial(_focus_kernel,
                               batch_block=batch_block, num_chunks=C)

    # Advisory cost estimate (whole call): projections + attention matmuls.
    flops = (2 * B * C * H * 3 * H          # fused QKV projection
             + 2 * B * C * C * H            # q @ k^T
             + 2 * B * C * C * H            # probs @ v
             + 2 * B * C * H * H)           # output projection
    bytes_accessed = (x2d.size * 2 + wqkv.size * 2 + wo_b.size * 2
                      + bqkv.size * 4 + bo_f.size * 4 + B * C * H * 4)
    cost = pl.CostEstimate(flops=flops, transcendentals=B * C * C,
                           bytes_accessed=bytes_accessed)

    out2d = pl.pallas_call(
        kernel,
        out_shape=jax.ShapeDtypeStruct((B * C, H), jnp.float32),
        grid_spec=pltpu.PrefetchScalarGridSpec(
            num_scalar_prefetch=0,
            grid=grid,
            in_specs=[x_spec, wqkv_spec, wo_spec, bqkv_spec, bo_spec],
            out_specs=out_spec,
        ),
        compiler_params=pltpu.CompilerParams(
            dimension_semantics=("parallel",)),
        cost_estimate=cost,
    )(x2d, wqkv, wo_b, bqkv, bo_f)

    return out2d.reshape(B, C, H)


def focus_attention_ref(candidate_tokens, wq_t, wk_t, wv_t, wo_t, bq, bk, bv, bo):
    """Pure-JAX f32 reference of the same math (for the correctness check)."""
    x = candidate_tokens.astype(jnp.float32)
    q = x @ wq_t + bq
    k = x @ wk_t + bk
    v = x @ wv_t + bv
    scores = q @ jnp.swapaxes(k, -1, -2)          # no 1/sqrt(H), per module
    probs = jax.nn.softmax(scores, axis=-1)
    ctx = probs @ v
    return ctx @ wo_t + bo


if __name__ == "__main__":
    # Small, deterministic configuration.
    B = 2            # batch
    NUM_CHUNKS = 8   # num_chunks (C)
    H = 128          # hidden_size
    SEQ = 64         # total sequence length -> chunk_size = 8
    VOCAB = 64

    key = jax.random.PRNGKey(0)
    k_ids, k_emb, k_wq, k_wk, k_wv, k_wo, k_bq, k_bk, k_bv, k_bo = \
        jax.random.split(key, 10)

    # "input_ids" and a toy, deterministic stand-in for the base model:
    # an embedding table; the chunk's last-token embedding plays the role of
    # base_model(chunk).last_hidden_state[:, -1, :].
    # TODO(synk): the pretrained AutoModelForCausalLM backbone / tokenizer are
    # not translatable; replaced by this deterministic embedding lookup.
    input_ids = jax.random.randint(k_ids, (B, SEQ), 0, VOCAB, dtype=jnp.int32)
    emb_table = jax.random.normal(k_emb, (VOCAB, H), dtype=jnp.float32) * 0.05

    chunk_size = SEQ // NUM_CHUNKS
    last_token_ids = input_ids.reshape(B, NUM_CHUNKS, chunk_size)[:, :, -1]  # (B, C)
    candidate_tokens = emb_table[last_token_ids]                             # (B, C, H)

    # Deterministic Linear params (PyTorch nn.Linear: y = x @ W^T + b).
    scale = 1.0 / (H ** 0.5)
    wq = jax.random.uniform(k_wq, (H, H), jnp.float32, -scale, scale)
    wk = jax.random.uniform(k_wk, (H, H), jnp.float32, -scale, scale)
    wv = jax.random.uniform(k_wv, (H, H), jnp.float32, -scale, scale)
    wo = jax.random.uniform(k_wo, (H, H), jnp.float32, -scale, scale)
    bq = jax.random.uniform(k_bq, (1, H), jnp.float32, -scale, scale)
    bk = jax.random.uniform(k_bk, (1, H), jnp.float32, -scale, scale)
    bv = jax.random.uniform(k_bv, (1, H), jnp.float32, -scale, scale)
    bo = jax.random.uniform(k_bo, (1, H), jnp.float32, -scale, scale)

    # Pre-transpose weights (glue) so the kernel does plain x @ W_t + b.
    wq_t, wk_t, wv_t, wo_t = wq.T, wk.T, wv.T, wo.T

    out = focus_attention_pallas(candidate_tokens, wq_t, wk_t, wv_t, wo_t,
                                 bq, bk, bv, bo)
    out = jax.block_until_ready(out)

    ref = focus_attention_ref(candidate_tokens, wq_t, wk_t, wv_t, wo_t,
                              bq, bk, bv, bo)
    assert out.shape == (B, NUM_CHUNKS, H)
    # bf16 matmul operands + approx reciprocal -> loosened tolerance vs the
    # f32 reference (errors well under 1e-3 at these magnitudes).
    assert jnp.allclose(out, ref, atol=5e-3, rtol=5e-3), "mismatch vs reference"

    print("KERNEL_OK")
</pallas_src>

<mosaic_0001>
module attributes {stable_mosaic.version = 11 : i64} {
  func.func @_focus_kernel(%arg0: i32, %arg1: memref<16x128xbf16, #tpu.memory_space<vmem>>, %arg2: memref<128x384xbf16, #tpu.memory_space<vmem>>, %arg3: memref<128x128xbf16, #tpu.memory_space<vmem>>, %arg4: memref<1x384xf32, #tpu.memory_space<vmem>>, %arg5: memref<1x128xf32, #tpu.memory_space<vmem>>, %arg6: memref<16x128xf32, #tpu.memory_space<vmem>>) attributes {dimension_semantics = [#tpu.dimension_semantics<parallel>], iteration_bounds = array<i64: 1>, scalar_prefetch = 0 : i64, scratch_operands = 0 : i64, tpu.core_type = #tpu.core_type<tc>, window_params = [{transform_indices = @transform_0, window_bounds = array<i64: 16, 128>}, {pipeline_mode = #tpu.pipeline_mode<synchronous>, transform_indices = @transform_1, window_bounds = array<i64: 128, 384>}, {pipeline_mode = #tpu.pipeline_mode<synchronous>, transform_indices = @transform_2, window_bounds = array<i64: 128, 128>}, {pipeline_mode = #tpu.pipeline_mode<synchronous>, transform_indices = @transform_3, window_bounds = array<i64: 1, 384>}, {pipeline_mode = #tpu.pipeline_mode<synchronous>, transform_indices = @transform_4, window_bounds = array<i64: 1, 128>}, {transform_indices = @transform_5, window_bounds = array<i64: 16, 128>}]} {
    %c0 = arith.constant 0 : index
    %c0_0 = arith.constant 0 : index
    %0 = vector.load %arg1[%c0, %c0_0] : memref<16x128xbf16, #tpu.memory_space<vmem>>, vector<16x128xbf16>
    %c0_1 = arith.constant 0 : index
    %c0_2 = arith.constant 0 : index
    %1 = vector.load %arg2[%c0_1, %c0_2] : memref<128x384xbf16, #tpu.memory_space<vmem>>, vector<128x384xbf16>
    %cst = arith.constant dense<0.000000e+00> : vector<16x384xf32>
    %2 = tpu.matmul %0, %1, %cst {dimension_numbers = #tpu.dot_dimension_numbers<[1], [0], [0], [1], [0, 0, 1, 1], [], []>} : vector<16x128xbf16>, vector<128x384xbf16>, vector<16x384xf32> -> vector<16x384xf32>
    %c0_3 = arith.constant 0 : index
    %c0_4 = arith.constant 0 : index
    %3 = vector.load %arg4[%c0_3, %c0_4] : memref<1x384xf32, #tpu.memory_space<vmem>>, vector<1x384xf32>
    %4 = vector.broadcast %3 : vector<1x384xf32> to vector<16x384xf32>
    %5 = arith.addf %2, %4 : vector<16x384xf32>
    %6 = vector.extract_strided_slice %5 {offsets = [0, 0], sizes = [16, 128], strides = [1, 1]} : vector<16x384xf32> to vector<16x128xf32>
    %7 = vector.shape_cast %6 : vector<16x128xf32> to vector<2x8x128xf32>
    %8 = vector.extract_strided_slice %5 {offsets = [0, 128], sizes = [16, 128], strides = [1, 1]} : vector<16x384xf32> to vector<16x128xf32>
    %9 = vector.shape_cast %8 : vector<16x128xf32> to vector<2x8x128xf32>
    %10 = vector.extract_strided_slice %5 {offsets = [0, 256], sizes = [16, 128], strides = [1, 1]} : vector<16x384xf32> to vector<16x128xf32>
    %11 = vector.shape_cast %10 : vector<16x128xf32> to vector<2x8x128xf32>
    "tpu.trace_start"() <{level = 10 : i32, message = "bcd,bed->bce"}> : () -> ()
    %cst_5 = arith.constant dense<0.000000e+00> : vector<2x8x8xf32>
    %12 = tpu.matmul %7, %9, %cst_5 {dimension_numbers = #tpu.dot_dimension_numbers<[2], [2], [1], [1], [0, 0, 0, 1, 1, 1], [0], [0]>} : vector<2x8x128xf32>, vector<2x8x128xf32>, vector<2x8x8xf32> -> vector<2x8x8xf32>
    "tpu.trace_stop"() : () -> ()
    %cst_6 = arith.constant dense<0xFF800000> : vector<2x8xf32>
    %13 = vector.multi_reduction <maximumf>, %12, %cst_6 [2] : vector<2x8x8xf32> to vector<2x8xf32>
    %14 = vector.shape_cast %13 : vector<2x8xf32> to vector<2x8x1xf32>
    %15 = vector.broadcast %14 : vector<2x8x1xf32> to vector<2x8x8xf32>
    %16 = arith.subf %12, %15 : vector<2x8x8xf32>
    %17 = math.exp %16 : vector<2x8x8xf32>
    %cst_7 = arith.constant dense<0.000000e+00> : vector<2x8xf32>
    %18 = vector.multi_reduction <add>, %17, %cst_7 [2] : vector<2x8x8xf32> to vector<2x8xf32>
    %19 = vector.shape_cast %18 : vector<2x8xf32> to vector<2x8x1xf32>
    %20 = tpu.reciprocal %19 {approx = true} : vector<2x8x1xf32> -> vector<2x8x1xf32>
    %21 = vector.broadcast %20 : vector<2x8x1xf32> to vector<2x8x8xf32>
    %22 = arith.mulf %17, %21 : vector<2x8x8xf32>
    "tpu.trace_start"() <{level = 10 : i32, message = "bce,bed->bcd"}> : () -> ()
    %cst_8 = arith.constant dense<0.000000e+00> : vector<2x8x128xf32>
    %23 = tpu.matmul %22, %11, %cst_8 {dimension_numbers = #tpu.dot_dimension_numbers<[2], [1], [1], [2], [0, 0, 0, 1, 1, 2], [0], [0]>} : vector<2x8x8xf32>, vector<2x8x128xf32>, vector<2x8x128xf32> -> vector<2x8x128xf32>
    "tpu.trace_stop"() : () -> ()
    %24 = vector.shape_cast %23 : vector<2x8x128xf32> to vector<16x128xf32>
    %25 = arith.truncf %24 : vector<16x128xf32> to vector<16x128xbf16>
    %c0_9 = arith.constant 0 : index
    %c0_10 = arith.constant 0 : index
    %26 = vector.load %arg3[%c0_9, %c0_10] : memref<128x128xbf16, #tpu.memory_space<vmem>>, vector<128x128xbf16>
    %cst_11 = arith.constant dense<0.000000e+00> : vector<16x128xf32>
    %27 = tpu.matmul %25, %26, %cst_11 {dimension_numbers = #tpu.dot_dimension_numbers<[1], [0], [0], [1], [0, 0, 1, 1], [], []>} : vector<16x128xbf16>, vector<128x128xbf16>, vector<16x128xf32> -> vector<16x128xf32>
    %c0_12 = arith.constant 0 : index
    %c0_13 = arith.constant 0 : index
    %28 = vector.load %arg5[%c0_12, %c0_13] : memref<1x128xf32, #tpu.memory_space<vmem>>, vector<1x128xf32>
    %29 = vector.broadcast %28 : vector<1x128xf32> to vector<16x128xf32>
    %30 = arith.addf %27, %29 : vector<16x128xf32>
    %c0_14 = arith.constant 0 : index
    %c0_15 = arith.constant 0 : index
    %31 = vector.load %arg6[%c0_14, %c0_15] : memref<16x128xf32, #tpu.memory_space<vmem>>, vector<16x128xf32>
    tpu.vector_store %arg6[%c0_14, %c0_15], %30 {strides = array<i32>} : memref<16x128xf32, #tpu.memory_space<vmem>>, vector<16x128xf32>,
    return
  }
  func.func @transform_0(%arg0: i32) -> (i32, i32) {
    %c0_i32 = arith.constant 0 : i32
    %c0_i32_0 = arith.constant 0 : i32
    return %arg0, %c0_i32 : i32, i32
  }
  func.func @transform_1(%arg0: i32) -> (i32, i32) {
    %c0_i32 = arith.constant 0 : i32
    %c0_i32_0 = arith.constant 0 : i32
    %c0_i32_1 = arith.constant 0 : i32
    return %c0_i32, %c0_i32_0 : i32, i32
  }
  func.func @transform_2(%arg0: i32) -> (i32, i32) {
    %c0_i32 = arith.constant 0 : i32
    %c0_i32_0 = arith.constant 0 : i32
    %c0_i32_1 = arith.constant 0 : i32
    return %c0_i32, %c0_i32_0 : i32, i32
  }
  func.func @transform_3(%arg0: i32) -> (i32, i32) {
    %c0_i32 = arith.constant 0 : i32
    %c0_i32_0 = arith.constant 0 : i32
    %c0_i32_1 = arith.constant 0 : i32
    return %c0_i32, %c0_i32_0 : i32, i32
  }
  func.func @transform_4(%arg0: i32) -> (i32, i32) {
    %c0_i32 = arith.constant 0 : i32
    %c0_i32_0 = arith.constant 0 : i32
    %c0_i32_1 = arith.constant 0 : i32
    return %c0_i32, %c0_i32_0 : i32, i32
  }
  func.func @transform_5(%arg0: i32) -> (i32, i32) {
    %c0_i32 = arith.constant 0 : i32
    %c0_i32_0 = arith.constant 0 : i32
    return %arg0, %c0_i32 : i32, i32
  }
}

</mosaic_0001>

<bundles_post_ra>
// kernel: focus_attention_pallas.1
= control target key start
LH: loop header
LB: loop body
LE: loop exit
PB: predicated region body
PF: predicated region fallthrough
CT: control target
= control target key end

     0   :  { %v932_v2 = vmov 0   ;;  %s1133_s0 = inlined_call_operand.vmem [shape: bf16[16,128], index: 0, kind: input, shape index: {}]   ;;  %s1134_s1 = inlined_call_operand.vmem [shape: bf16[128,384], index: 1, kind: input, shape index: {}]   ;;  %s1135_s2 = inlined_call_operand.vmem [shape: bf16[128,128], index: 2, kind: input, shape index: {}]   ;;  %s1136_s3 = inlined_call_operand.vmem [shape: f32[1,384], index: 3, kind: input, shape index: {}]   ;;  %s1137_s4 = inlined_call_operand.vmem [shape: f32[1,128], index: 4, kind: input, shape index: {}]   ;;  %s1138_s5 = inlined_call_operand.hbm [shape: f32[16,128], index: 5, kind: output, shape index: {}]  }
   0x1   :  { %v859_v0 = vld [vmem:[%s1134_s1 + $0x4] ss:$12 sps:$4 sm:$0xff]   ;;  %v861_v1 = vld [vmem:[%s1134_s1] ss:$12 sps:$4 sm:$0xff]   ;;  %239 = vmatprep.mubr.bf16.mxu1 %v932_v2  ;;  %v862_v3 = vld [vmem:[%s1134_s1 + $0x1c] ss:$12 sps:$4 sm:$0xff]  }
   0x2   :  { %207 = vmatprep.subr.bf16.mxu1 %v859_v0  ;;  %v864_v4 = vld [vmem:[%s1134_s1 + $0x18] ss:$12 sps:$4 sm:$0xff]   ;;  %v865_v5 = vld [vmem:[%s1134_s1 + $0x34] ss:$12 sps:$4 sm:$0xff]   ;;  %v867_v6 = vld [vmem:[%s1134_s1 + $0x30] ss:$12 sps:$4 sm:$0xff]  }
   0x3   :  { %208 = vmatpush1.bf16.msra.mxu1 %v861_v1  ;;  %v868_v7 = vld [vmem:[%s1134_s1 + $0x4c] ss:$12 sps:$4 sm:$0xff]   ;;  %v870_v8 = vld [vmem:[%s1134_s1 + $0x48] ss:$12 sps:$4 sm:$0xff]   ;;  %v871_v9 = vld [vmem:[%s1134_s1 + $0x64] ss:$12 sps:$4 sm:$0xff]  }
   0x4   :  { %209 = vmatprep.subr.bf16.mxu1 %v862_v3  ;;  %v873_v10 = vld [vmem:[%s1134_s1 + $0x60] ss:$12 sps:$4 sm:$0xff]   ;;  %v874_v11 = vld [vmem:[%s1134_s1 + $0x7c] ss:$12 sps:$4 sm:$0xff]   ;;  %v876_v12 = vld [vmem:[%s1134_s1 + $0x78] ss:$12 sps:$4 sm:$0xff]  }
   0x5   :  { %v877_v13 = vld [vmem:[%s1134_s1 + $0x94] ss:$12 sps:$4 sm:$0xff]  }
   0x7   :  { %210 = vmatpush1.bf16.msra.mxu1 %v864_v4 }
   0x8   :  { %211 = vmatprep.subr.bf16.mxu1 %v865_v5 }
   0xb   :  { %212 = vmatpush1.bf16.msra.mxu1 %v867_v6 }
   0xc   :  { %213 = vmatprep.subr.bf16.mxu1 %v868_v7 }
   0xf   :  { %214 = vmatpush1.bf16.msra.mxu1 %v870_v8 }
  0x10   :  { %215 = vmatprep.subr.bf16.mxu1 %v871_v9 }
  0x13   :  { %216 = vmatpush1.bf16.msra.mxu1 %v873_v10 }
  0x14   :  { %217 = vmatprep.subr.bf16.mxu1 %v874_v11 }
  0x15   :  { %10 = vsyncpa [#allocation3], 0  ;;  %v879_v14 = vld [vmem:[%s1134_s1 + $0x90] ss:$12 sps:$4 sm:$0xff]   ;;  %v880_v15 = vld [vmem:[%s1134_s1 + $0xac] ss:$12 sps:$4 sm:$0xff]   ;;  %v58_v19 = vlaneseq }
  0x16   :  { %v882_v16 = vld [vmem:[%s1134_s1 + $0xa8] ss:$12 sps:$4 sm:$0xff]   ;;  %v883_v17 = vld [vmem:[%s1133_s0] sm:$0xff]   ;;  %v933_v18 = vmov 0.0   ;;  %vm934_vm0 = vmmov 0   ;;  %vm431_vm1 = vcmask 64512  }
  0x17   :  { %218 = vmatpush1.bf16.msra.mxu1 %v876_v12  ;;  %813 = vmatprep.subr.mxu0 %v933_v18  ;;  %v1025_v20 = vshrl.u32 %v58_v19, 7  ;;  %v1031_v22 = vld [vmem:[%s1136_s3] sm:$0x7]  ;;  %v884_v34 = vld [vmem:[%s1134_s1 + $0x8] ss:$12 sps:$4 sm:$0xff]   ;;  %v895_v11 = vld [vmem:[%s1135_s2 + $0x18] sm:$0xff]  }
  0x18   :  { %219 = vmatprep.subr.bf16.mxu1 %v877_v13  ;;  %815 = vmatprep.mubr.msk.f32.mxu0 %vm934_vm0, %v933_v18  ;;  %v885_v35 = vld [vmem:[%s1134_s1 + $0x20] ss:$12 sps:$4 sm:$0xff]   ;;  %v886_v36 = vld [vmem:[%s1134_s1 + $0x38] ss:$12 sps:$4 sm:$0xff]   ;;  %v887_v37 = vld [vmem:[%s1134_s1 + $0x50] ss:$12 sps:$4 sm:$0xff]  }
  0x19   :  { %v64_v21 = vsub.s32 1, %v1025_v20  ;;  %v60_v23 = vsub.s32 0, %v1025_v20  ;;  %v888_v38 = vld [vmem:[%s1134_s1 + $0x68] ss:$12 sps:$4 sm:$0xff]   ;;  %v889_v39 = vld [vmem:[%s1134_s1 + $0x80] ss:$12 sps:$4 sm:$0xff]  }
  0x1a   :  { %v890_v40 = vld [vmem:[%s1134_s1 + $0x98] ss:$12 sps:$4 sm:$0xff]   ;;  %v891_v41 = vld [vmem:[%s1134_s1 + $0xb0] ss:$12 sps:$4 sm:$0xff]   ;;  %v68_v58 = vsub.s32 2, %v1025_v20  ;;  %v893_v9 = vld [vmem:[%s1135_s2 + $0x8] sm:$0xff]  }
  0x1b   :  { %220 = vmatpush1.bf16.msra.mxu1 %v879_v14  ;;  %v65_v24 = vrot.slane %v1031_v22, %v64_v21  ;;  %v61_v26 = vrot.slane %v1031_v22, %v60_v23  ;;  %v892_v7 = vld [vmem:[%s1135_s2] sm:$0xff]   ;;  %v894_v10 = vld [vmem:[%s1135_s2 + $0x10] sm:$0xff]   ;;  %v897_v13 = vld [vmem:[%s1135_s2 + $0x28] sm:$0xff]   ;;  %s935_s8 = smov [#allocation2]  }
  0x1c   :  { %221 = vmatprep.subr.bf16.mxu1 %v880_v15  ;;  %v69_v60 = vrot.slane %v1031_v22, %v68_v58  ;;  %v896_v12 = vld [vmem:[%s1135_s2 + $0x20] sm:$0xff]   ;;  %v898_v14 = vld [vmem:[%s1135_s2 + $0x30] sm:$0xff]   ;;  %v899_v15 = vld [vmem:[%s1135_s2 + $0x38] sm:$0xff]   ;;  %s720_s9 = sshll.u32 %s935_s8, 4  ;;  %s721_s9 = int_to_ptr.vmem [resolvable:$true] %s720_s9 }
  0x1d   :  { %v758_v22 = vld [vmem:[%s1137_s4] ss:$0 sm:$0xff]  ;;  %s908_s2 = scalar_lea.vmem %s721_s9, 256  ;;  %p913_p1 = scmp.lt.s32.totalorder %s721_s9, %s721_s9 }
  0x1e   :  { %p909_p0 = scmp.ne.s32.totalorder %s721_s9, %s908_s2  ;;  %p914_p2 = scmp.lt.s32.totalorder %s908_s2, %s908_s2 }
  0x1f   :  { %222 = vmatpush1.bf16.msra.mxu1 %v882_v16 }
  0x20   :  { %793 = vmatprep.subr.bf16.mxu1 %v933_v18  ;;  %p915_p3 = por %p914_p2, %p913_p1 }
  0x22   :  { %240 = vmatmul.mubr.bf16.vlgmr.msra.gmra.mrb[0].mxu1 %v883_v17  ;;  %p916_p4 = pnand %p915_p3, %p909_p0 }
  0x23   :  { %809 = vmatprep.mubr.msk.bf16.mxu1 %vm934_vm0, %v933_v18  ;;  %794 = vmatpush3.bf16.msra.mxu1 %v884_v34 }
  0x24   :  { %795 = vmatprep.subr.bf16.mxu1 %v933_v18 }
  0x27   :  { %796 = vmatpush3.bf16.msra.mxu1 %v885_v35 }
  0x28   :  { %797 = vmatprep.subr.bf16.mxu1 %v933_v18 }
  0x2b   :  { %798 = vmatpush3.bf16.msra.mxu1 %v886_v36 }
  0x2c   :  { %799 = vmatprep.subr.bf16.mxu1 %v933_v18 }
  0x2f   :  { %800 = vmatpush3.bf16.msra.mxu1 %v887_v37 }
  0x30   :  { %801 = vmatprep.subr.bf16.mxu1 %v933_v18 }
  0x33   :  { %802 = vmatpush3.bf16.msra.mxu1 %v888_v38 }
  0x34   :  { %803 = vmatprep.subr.bf16.mxu1 %v933_v18 }
  0x37   :  { %804 = vmatpush3.bf16.msra.mxu1 %v889_v39 }
  0x38   :  { %805 = vmatprep.subr.bf16.mxu1 %v933_v18 }
  0x3b   :  { %806 = vmatpush3.bf16.msra.mxu1 %v890_v40 }
  0x3c   :  { %807 = vmatprep.subr.bf16.mxu1 %v933_v18 }
  0x3f   :  { %808 = vmatpush3.bf16.msra.mxu1 %v891_v41 }
  0x42   :  { %810 = vmatmul.mubr.bf16.vlgmr.msra.gmra.mrb[4].mxu1 %v883_v17 }
  0xf5   :  { %v241_v25 = vpop.f32.mrb[0].mxu1 }
  0xf6   :  { %v243_v27 = vpop.f32.mrb[1].mxu1  ;;  %v242_v31 = vadd.f32 %v241_v25, %v61_v26 }
  0xf7   :  { %v244_v28 = vadd.f32 %v243_v27, %v65_v24  ;;  %v245_v29 = vpop.f32.mrb[2].mxu1 }
  0xf8   :  { %v247_v30 = vpop.f32.mrb[3].mxu1  ;;  %v246_v33 = vadd.f32 %v245_v29, %v61_v26 }
  0xf9   :  { %814 = vmatpush3.xpose.msra.mxu0 %v244_v28  ;;  %v248_v32 = vadd.f32 %v247_v30, %v65_v24 }
  0xfa   :  { %818 = vmatprep.subr.mxu0 %v933_v18 }
  0xfc   :  { %816 = vmatmul.mubr.f32.vlgmr.msra.gmra.mrb[0].mxu0 %v242_v31 }
  0xfd   :  { %819 = vmatpush3.xpose.msra.mxu0 %v248_v32  ;;  %820 = vmatprep.mubr.msk.f32.mxu0 %vm934_vm0, %v933_v18 }
  0xfe   :  { %823 = vmatprep.subr.mxu0 %v933_v18 }
 0x100   :  { %821 = vmatmul.mubr.f32.vlgmr.msra.gmra.mrb[2].mxu0 %v246_v33 }
 0x101   :  { %825 = vmatprep.mubr.msk.f32.mxu0 %vm934_vm0, %v933_v18 }
 0x115   :  { %v284_v59 = vpop.f32.mrb[4].mxu1 }
 0x116   :  { %v811_v61 = vpop.f32.mrb[5].mxu1  ;;  %v285_v63 = vadd.f32 %v284_v59, %v69_v60 }
 0x117   :  { %v287_v62 = vpop.f32.mrb[6].mxu1 }
 0x118   :  { %v812_v0 = vpop.f32.mrb[7].mxu1  ;;  %v288_v1 = vadd.f32 %v287_v62, %v69_v60  ;;  %824 = vmatpush3.msra.mxu0 %v285_v63 }
 0x119   :  { %828 = vmatprep.subr.mxu0 %v933_v18 }
 0x1cf   :  { %v357_v42 = vpop.f32.mrb[0].mxu0 }
 0x1d0   :  { %v817_v43 = vpop.f32.mrb[1].mxu0  ;;  %v432_v44 = vsel %vm431_vm1, %v357_v42, -inf }
 0x1d1   :  { %433 = vmax.xlane.f32.xlu0 %v432_v44 }
 0x1d3   :  { %v427_v45 = vpop.f32.mrb[2].mxu0 }
 0x1d4   :  { %v822_v46 = vpop.f32.mrb[3].mxu0  ;;  %v435_v47 = vsel %vm431_vm1, %v427_v45, -inf }
 0x1d5   :  { %436 = vmax.xlane.f32.xlu0 %v435_v47 }
 0x25e   :  { %v434_v48 = vpop.xlane.xlu0 %433 }
 0x25f   :  { %v438_v49 = vsub.f32 %v357_v42, %v434_v48 }
 0x261   :  { %v440_v50 = vmul.f32 1.442695, %v438_v49 }
 0x262   :  { %v437_v51 = vpop.xlane.xlu0 %436 }
 0x263   :  { %900 = vpow2.f32 %v440_v50  ;;  %v439_v52 = vsub.f32 %v427_v45, %v437_v51 }
 0x265   :  { %v442_v53 = vmul.f32 1.442695, %v439_v52 }
 0x267   :  { %902 = vpow2.f32 %v442_v53 }
 0x26d   :  { %v901_v54 = vpop.eup %900 }
 0x26e   :  { %v444_v55 = vsel %vm431_vm1, %v901_v54, 0.0 }
 0x26f   :  { %445 = vadd.xlane.f32.xlu1 %v444_v55 }
 0x271   :  { %v903_v56 = vpop.eup %902 }
 0x272   :  { %v447_v57 = vsel %vm431_vm1, %v903_v56, 0.0 }
 0x273   :  { %448 = vadd.xlane.f32.xlu1 %v447_v57 }
 0x2fc   :  { %v446_v2 = vpop.xlane.xlu1 %445 }
 0x2fd   :  { %904 = vrcp.f32 %v446_v2 }
 0x300   :  { %v449_v3 = vpop.xlane.xlu1 %448 }
 0x301   :  { %906 = vrcp.f32 %v449_v3 }
 0x307   :  { %v905_v4 = vpop.eup %904 }
 0x308   :  { %v452_v5 = vmul.f32 %v905_v4, %v901_v54 }
 0x30a   :  { %826 = vmatmul.mubr.msk.f32.vlgmr.msra.gmra.mrb[4].mxu0 %vm431_vm1, %v452_v5 }
 0x30b   :  { %v907_v6 = vpop.eup %906  ;;  %829 = vmatpush3.msra.mxu0 %v288_v1  ;;  %830 = vmatprep.mubr.msk.f32.mxu0 %vm934_vm0, %v933_v18 }
 0x30c   :  { %v453_v8 = vmul.f32 %v907_v6, %v903_v56  ;;  %833 = vmatprep.subr.bf16.mxu0 %v933_v18 }
 0x30e   :  { %831 = vmatmul.mubr.msk.f32.vlgmr.msra.gmra.mrb[6].mxu0 %vm431_vm1, %v453_v8 }
 0x30f   :  { %834 = vmatpush3.bf16.msra.mxu0 %v892_v7  ;;  %849 = vmatprep.mubr.msk.bf16.mxu0 %vm934_vm0, %v933_v18 }
 0x310   :  { %835 = vmatprep.subr.bf16.mxu0 %v933_v18 }
 0x313   :  { %836 = vmatpush3.bf16.msra.mxu0 %v893_v9 }
 0x314   :  { %837 = vmatprep.subr.bf16.mxu0 %v933_v18 }
 0x317   :  { %838 = vmatpush3.bf16.msra.mxu0 %v894_v10 }
 0x318   :  { %839 = vmatprep.subr.bf16.mxu0 %v933_v18 }
 0x31b   :  { %840 = vmatpush3.bf16.msra.mxu0 %v895_v11 }
 0x31c   :  { %841 = vmatprep.subr.bf16.mxu0 %v933_v18 }
 0x31f   :  { %842 = vmatpush3.bf16.msra.mxu0 %v896_v12 }
 0x320   :  { %843 = vmatprep.subr.bf16.mxu0 %v933_v18 }
 0x323   :  { %844 = vmatpush3.bf16.msra.mxu0 %v897_v13 }
 0x324   :  { %845 = vmatprep.subr.bf16.mxu0 %v933_v18 }
 0x327   :  { %846 = vmatpush3.bf16.msra.mxu0 %v898_v14 }
 0x328   :  { %847 = vmatprep.subr.bf16.mxu0 %v933_v18 }
 0x32b   :  { %848 = vmatpush3.bf16.msra.mxu0 %v899_v15 }
 0x3dd   :  { %v523_v16 = vpop.f32.mrb[4].mxu0 }
 0x3de   :  { %v827_v17 = vpop.f32.mrb[5].mxu0 }
 0x3e1   :  { %v596_v19 = vpop.f32.mrb[6].mxu0 }
 0x3e2   :  { %v600_v20 = vpack.c.bf16 %v596_v19, %v523_v16  ;;  %v832_v21 = vpop.f32.mrb[7].mxu0 }
 0x3e4   :  { %850 = vmatmul.mubr.bf16.vlgmr.msra.gmra.mrb[8].mxu0 %v600_v20 }
 0x4b7   :  { %v706_v23 = vpop.f32.mrb[8].mxu0 }
 0x4b8   :  { %v707_v24 = vadd.f32 %v758_v22, %v706_v23  ;;  %v851_v18 = vpop.f32.mrb[9].mxu0 }
 0x4b9   :  { %v709_v25 = vpop.f32.mrb[10].mxu0 }
 0x4ba   :  { %713 = vst [vmem:[#allocation2] sm:$0xff] %v707_v24  ;;  %v710_v26 = vadd.f32 %v758_v22, %v709_v25  ;;  %v852_v27 = vpop.f32.mrb[11].mxu0 }
 0x4bc   :  { %714 = vst [vmem:[#allocation2 + $0x8] sm:$0xff] %v710_v26 }
 0x4bd   :  { %919 = shalt.err (!%p916_p4)
}
 0x4be   :  { %s920_s11 = scalar_lea.hbm %s1138_s5, 256 }
 0x4bf   :  { %p921_p5 = scmp.ne.s32.totalorder %s1138_s5, %s920_s11  ;;  %p924_p6 = scmp.lt.u32.totalorder %s920_s11, %s1138_s5 }
 0x4c1   :  { %p926_p7 = pnand %p924_p6, %p921_p5 }
 0x4c3   :  { %929 = shalt.err (!%p926_p7)
}
 0x4c4   :  { %s936_s16 = smov 128   ;;  %s937_s17 = smov 8  }
 0x4c5   :  { %726 = dma.vmem_to_hbm [thread:$0]  %s721_s9, 256, %s1138_s5, [#allocation3], %s936_s16, %s936_s16, %s937_s17  }
 0x4c6   :  { %930 = dma.done.wait [#allocation3], 256  }
 0x4c7   :  { %931 = vsyncadd [#allocation3], 4294967040 }
 0x4c8   :  { %730 = vsyncpa [#allocation3], 1 }

</bundles_post_ra>
